<compile_context>
chip_gen: v7x
topology: tpu7x:2x2x1
jax: 0.10.0
libtpu: 0.0.40
codegen_flags: <defaults>
</compile_context>

<pallas_src>
import functools

import jax
import jax.numpy as jnp
from jax.experimental import pallas as pl
from jax.experimental.pallas import tpu as pltpu

BN_EPS = 1e-5


# ----------------------------------------------------------------------------
# Generation-aware budgets [R3].
# ----------------------------------------------------------------------------
def _auto_budgets():
    """Returns (vmem_limit_bytes, tile_cap_n, tile_cap_k, tile_cap_hidden)."""
    vmem_cap = None
    try:
        vmem_cap = getattr(pltpu.get_tpu_info(), "vmem_capacity_bytes", None)
    except Exception:  # not on TPU / API mismatch: fall back conservatively
        vmem_cap = None
    if vmem_cap is None:
        # Unknown generation: stay under every generation's physical VMEM.
        return 32 * 1024 * 1024, 3584, 2048, 4096
    if vmem_cap <= 64 * 1024 * 1024:
        # v7x: 64 MiB VMEM per TensorCore -> ~44 MiB pipeline budget.
        return 44 * 1024 * 1024, 3584, 2048, 4096
    # v5e / v6e: 128 MiB physical VMEM -> plenty of headroom.
    return 56 * 1024 * 1024, 3584, 2048, 4096


def _pick_tile(dim, cap):
    """Largest multiple of 128 <= cap that divides dim (dim itself if <= cap)."""
    if dim <= cap:
        return dim
    t = (cap // 128) * 128
    while t > 128 and dim % t != 0:
        t -= 128
    assert dim % t == 0
    return t


# ----------------------------------------------------------------------------
# Kernel 1: fused Linear + BatchNorm1d (batch stats) + optional ReLU,
# tiled over output features.  BN stats are per-feature, so each feature tile
# is independent; the batch dim is the full block, so the stats are exact.
# The epilogue stores in o_ref.dtype, letting layer 1 emit bf16 h2 [R2].
# ----------------------------------------------------------------------------
def _fc_bn_kernel(x_ref, w_ref, b_ref, g_ref, beta_ref, o_ref, *, apply_relu):
    x = x_ref[...].astype(w_ref.dtype)            # feed MXU in the weight dtype
    h = jnp.dot(x, w_ref[...], preferred_element_type=jnp.float32)
    h = h + b_ref[...]
    mean = jnp.mean(h, axis=0, keepdims=True)
    var = jnp.mean(jnp.square(h - mean), axis=0, keepdims=True)   # biased var
    out = (h - mean) * jax.lax.rsqrt(var + BN_EPS)
    out = out * g_ref[...] + beta_ref[...]
    if apply_relu:
        out = jnp.maximum(out, 0.0)
    o_ref[...] = out.astype(o_ref.dtype)


def fc_bn(x, w, b, gamma, beta, *, tile_n, apply_relu,
          out_dtype=jnp.float32, vmem_limit_bytes=None):
    B, K = x.shape
    K2, N = w.shape
    assert K == K2 and N % tile_n == 0
    kernel = functools.partial(_fc_bn_kernel, apply_relu=apply_relu)
    return pl.pallas_call(
        kernel,
        out_shape=jax.ShapeDtypeStruct((B, N), out_dtype),
        grid_spec=pltpu.PrefetchScalarGridSpec(
            num_scalar_prefetch=0,
            grid=(N // tile_n,),
            in_specs=[
                pl.BlockSpec((B, K), lambda j: (0, 0)),        # full batch
                pl.BlockSpec((K, tile_n), lambda j: (0, j)),
                pl.BlockSpec((1, tile_n), lambda j: (0, j)),
                pl.BlockSpec((1, tile_n), lambda j: (0, j)),
                pl.BlockSpec((1, tile_n), lambda j: (0, j)),
            ],
            out_specs=pl.BlockSpec((B, tile_n), lambda j: (0, j)),
        ),
        compiler_params=pltpu.CompilerParams(
            dimension_semantics=("parallel",),
            vmem_limit_bytes=vmem_limit_bytes),
    )(x, w, b, gamma, beta)


# ----------------------------------------------------------------------------
# Kernel 2: big output projection  out = (x @ W_q) * scale + b.
#  * grid = (N tiles, K tiles), reduction axis last ("arbitrary").
#  * x is VMEM-resident for the whole grid (constant block index); the
#    current K-slice is taken in-kernel with pl.ds (bf16 x -> half the
#    resident bytes [R2]).
#  * partial dots accumulate directly into the resident output block
#    (zero-initialized at k == 0); the per-output-channel dequant scale and
#    the bias are folded into the epilogue at the last k step [R1].
#  * On v7x the "parallel" j axis is megacore-shardable; verify in a trace
#    that both TensorCores pick up j slices (each TC has its own 64 MiB VMEM).
# ----------------------------------------------------------------------------
def _out_fc_kernel(x_ref, w_ref, scale_ref, b_ref, o_ref, *, tile_k):
    k = pl.program_id(1)

    @pl.when(k == 0)
    def _():
        o_ref[...] = jnp.zeros_like(o_ref)

    start = pl.multiple_of(k * tile_k, tile_k)
    xk = x_ref[:, pl.ds(start, tile_k)]
    w = w_ref[...]
    if jnp.dtype(w_ref.dtype).itemsize < 2:
        # int8 (v5e/v6e) / fp8-e4m3 (v7x) storage: halves/quarters the
        # dominant HBM stream; dequantization is deferred to the per-channel
        # scale in the epilogue.  (The in-kernel upcast temp is tile_k*tile_n
        # f32 -- budget for it, or upcast to bf16, when sizing full-size tiles.)
        xk = xk.astype(jnp.float32)
        w = w.astype(jnp.float32)
    else:
        xk = xk.astype(w_ref.dtype)               # no-op when x is already bf16
    o_ref[...] += jnp.dot(xk, w, preferred_element_type=jnp.float32)

    @pl.when(k == pl.num_programs(1) - 1)
    def _():
        o_ref[...] = o_ref[...] * scale_ref[...] + b_ref[...]


def matmul_scale_bias(x, w, scale, b, *, tile_n, tile_k,
                      vmem_limit_bytes=None, w_buffer_count=None):
    B, K = x.shape
    K2, N = w.shape
    assert K == K2 and K % tile_k == 0 and N % tile_n == 0
    assert scale.shape == (1, N) and b.shape == (1, N)

    w_spec_kwargs = {}
    if w_buffer_count is not None:
        # [R5] sweep pl.Buffered(3) at full size to hide the issue gap at each
        # j boundary (output writeback + scale/bias fetch).
        w_spec_kwargs["pipeline_mode"] = pl.Buffered(w_buffer_count)

    kernel = functools.partial(_out_fc_kernel, tile_k=tile_k)
    return pl.pallas_call(
        kernel,
        out_shape=jax.ShapeDtypeStruct((B, N), jnp.float32),
        grid_spec=pltpu.PrefetchScalarGridSpec(
            num_scalar_prefetch=0,
            grid=(N // tile_n, K // tile_k),
            in_specs=[
                # x: constant block index -> DMA'd once, VMEM-resident.
                pl.BlockSpec((B, K), lambda j, k: (0, 0)),
                pl.BlockSpec((tile_k, tile_n), lambda j, k: (k, j),
                             **w_spec_kwargs),
                pl.BlockSpec((1, tile_n), lambda j, k: (0, j)),   # scale
                pl.BlockSpec((1, tile_n), lambda j, k: (0, j)),   # bias
            ],
            out_specs=pl.BlockSpec((B, tile_n), lambda j, k: (0, j)),
        ),
        compiler_params=pltpu.CompilerParams(
            dimension_semantics=("parallel", "arbitrary"),
            vmem_limit_bytes=vmem_limit_bytes),
    )(x, w, scale, b)


# ----------------------------------------------------------------------------
# FlowResNet forward (Pallas) and a pure-JAX reference
# ----------------------------------------------------------------------------
def flow_resnet_forward(params, x, d_out, *, tile_cap_hidden=None,
                        tile_cap_n=None, tile_cap_k=None,
                        vmem_limit_bytes=None, w_buffer_count=None):
    # Full-size guidance (H2=32768, d_out padded to 50176, int8 w3):
    # auto budgets give tile_n=3584, tile_k=2048 (7 MiB int8 weight tile,
    # double-buffered) with a ~44 MiB (v7x) / ~56 MiB (v5e/v6e) vmem limit,
    # plus the 0.5 MiB bf16-resident h2 [R2].  Keep tile_k >= 2048 [R4].
    auto_vmem, auto_n, auto_k, auto_h = _auto_budgets()
    vmem_limit_bytes = auto_vmem if vmem_limit_bytes is None else vmem_limit_bytes
    tile_cap_n = auto_n if tile_cap_n is None else tile_cap_n
    tile_cap_k = auto_k if tile_cap_k is None else tile_cap_k
    tile_cap_hidden = auto_h if tile_cap_hidden is None else tile_cap_hidden

    w1, w2, w3 = params["w1"], params["w2"], params["w3"]

    # layer 0: Linear(d_in, H1) -> Dropout(0) -> BN1d -> ReLU   (negligible, K=2)
    h1 = fc_bn(x, w1, params["b1"], params["g1"], params["beta1"],
               tile_n=_pick_tile(w1.shape[1], tile_cap_hidden),
               apply_relu=True, vmem_limit_bytes=vmem_limit_bytes)
    # layer 1: Linear(H1, H2) -> Dropout(0) -> BN1d; the loop's last ReLU only
    # feeds the dead variable `x`, so out_fc reads the pre-ReLU BN output.
    # h2 is emitted directly in bf16 [R2].
    h2 = fc_bn(h1, w2, params["b2"], params["g2"], params["beta2"],
               tile_n=_pick_tile(w2.shape[1], tile_cap_hidden),
               apply_relu=False, out_dtype=jnp.bfloat16,
               vmem_limit_bytes=vmem_limit_bytes)
    # out_fc: Linear(H2, d_out), width zero-padded to a multiple of 128 in
    # storage; int8 weight + per-channel scale epilogue [R1].
    out_pad = matmul_scale_bias(
        h2, w3, params["w3_scale"], params["b3"],
        tile_n=_pick_tile(w3.shape[1], tile_cap_n),
        tile_k=_pick_tile(w3.shape[0], tile_cap_k),
        vmem_limit_bytes=vmem_limit_bytes,
        w_buffer_count=w_buffer_count)
    return out_pad[:, :d_out]


def reference_forward(params, x, d_out):
    # Same quantization/dtype path as the kernels so the comparison isolates
    # the Pallas plumbing.  NOTE (review): the bf16/int8 storage deviates from
    # the f32 PyTorch model; validate once against a true f32 reference before
    # shipping (expect ~1e-2 relative error on logits).
    def bn(h, g, b):
        mean = jnp.mean(h, axis=0, keepdims=True)
        var = jnp.mean(jnp.square(h - mean), axis=0, keepdims=True)
        return (h - mean) * jax.lax.rsqrt(var + BN_EPS) * g + b

    w1, w2, w3 = params["w1"], params["w2"], params["w3"]
    h = jnp.dot(x.astype(w1.dtype), w1,
                preferred_element_type=jnp.float32) + params["b1"]
    h = jax.nn.relu(bn(h, params["g1"], params["beta1"]))
    h = jnp.dot(h.astype(w2.dtype), w2,
                preferred_element_type=jnp.float32) + params["b2"]
    h = bn(h, params["g2"], params["beta2"]).astype(jnp.bfloat16)   # bf16 h2
    out = jnp.dot(h.astype(jnp.float32), w3.astype(jnp.float32),
                  preferred_element_type=jnp.float32)
    out = out * params["w3_scale"] + params["b3"]
    return out[:, :d_out]


def init_params(key, d_in, h1, h2, d_out, d_out_pad):
    ks = jax.random.split(key, 10)

    def nrm(k, shape, scale):
        return scale * jax.random.normal(k, shape, jnp.float32)

    # Real-width out_fc weight/bias, zero-padded on the extra columns so the
    # padded tail cannot leak into the sliced output.
    w3_f32 = jnp.pad(nrm(ks[8], (h2, d_out), 0.02),
                     ((0, 0), (0, d_out_pad - d_out)))
    b3 = jnp.pad(nrm(ks[9], (1, d_out), 0.02),
                 ((0, 0), (0, d_out_pad - d_out)))
    # [R1] per-output-channel symmetric int8 quantization of the dominant
    # weight stream (use jnp.float8_e4m3fn here on v7x; same scale epilogue).
    absmax = jnp.max(jnp.abs(w3_f32), axis=0, keepdims=True)
    w3_scale = jnp.maximum(absmax, 1e-8) / 127.0
    w3_q = jnp.clip(jnp.round(w3_f32 / w3_scale), -127, 127).astype(jnp.int8)

    return {
        # layer 0 is negligible (K=2): keep its weight in f32.
        "w1": nrm(ks[0], (d_in, h1), 0.5),
        "b1": nrm(ks[1], (1, h1), 0.05),
        "g1": 1.0 + nrm(ks[2], (1, h1), 0.05),
        "beta1": nrm(ks[3], (1, h1), 0.05),
        # layer-1 weight stream in bf16 (~1% of total bytes).
        "w2": nrm(ks[4], (h1, h2), 0.05).astype(jnp.bfloat16),
        "b2": nrm(ks[5], (1, h2), 0.02),
        "g2": 1.0 + nrm(ks[6], (1, h2), 0.05),
        "beta2": nrm(ks[7], (1, h2), 0.05),
        # out_fc weight in int8 + per-channel scale (f32 epilogue params).
        "w3": w3_q,
        "w3_scale": w3_scale,
        "b3": b3,
    }


if __name__ == "__main__":
    # SMALL, structurally identical shapes: the true-size w3 (32768 x 50176)
    # is several GiB and exceeds the sandbox memory budget, so the demo scales
    # the hidden/output widths down while keeping the exact layer pattern
    # (incl. a non-128-multiple output width exercising the pad/slice path).
    D_IN, H1, H2 = 2, 256, 1024
    D_OUT, D_OUT_PAD = 1500, 1536   # 1536 = 12 * 128 (lane-aligned storage)
    B = 8                           # BN batch statistics need B > 1

    key = jax.random.PRNGKey(0)
    pkey, xkey = jax.random.split(key)
    params = init_params(pkey, D_IN, H1, H2, D_OUT, D_OUT_PAD)
    x = jax.random.normal(xkey, (B, D_IN), jnp.float32)

    ref = jax.block_until_ready(reference_forward(params, x, D_OUT))

    # (1) small tile caps -> multi-(j, k) out_fc grid (6 x 4 here), exercising
    #     zero-init / resident-output accumulation / scale+bias epilogue.
    out = jax.block_until_ready(
        flow_resnet_forward(params, x, D_OUT,
                            tile_cap_hidden=256, tile_cap_n=256,
                            tile_cap_k=256))
    assert out.shape == (B, D_OUT), out.shape
    assert out.dtype == jnp.float32
    if not jnp.allclose(out, ref, rtol=3e-2, atol=3e-2):
        max_err = float(jnp.max(jnp.abs(out - ref)))
        raise AssertionError(f"small-tile mismatch vs reference, max abs err = {max_err}")

    # (2) generation-aware auto tile caps + vmem budget [R3] (single-step grid
    #     at these small shapes, but exercises the auto-budget path end-to-end).
    out2 = jax.block_until_ready(flow_resnet_forward(params, x, D_OUT))
    if not jnp.allclose(out2, ref, rtol=3e-2, atol=3e-2):
        max_err = float(jnp.max(jnp.abs(out2 - ref)))
        raise AssertionError(f"auto-tile mismatch vs reference, max abs err = {max_err}")

    print("KERNEL_OK")
</pallas_src>

<mosaic_0001>
module attributes {stable_mosaic.version = 11 : i64} {
  func.func @_fc_bn_kernel(%arg0: i32, %arg1: memref<8x2xf32, #tpu.memory_space<vmem>>, %arg2: memref<2x256xf32, #tpu.memory_space<vmem>>, %arg3: memref<1x256xf32, #tpu.memory_space<vmem>>, %arg4: memref<1x256xf32, #tpu.memory_space<vmem>>, %arg5: memref<1x256xf32, #tpu.memory_space<vmem>>, %arg6: memref<8x256xf32, #tpu.memory_space<vmem>>) attributes {dimension_semantics = [#tpu.dimension_semantics<parallel>], iteration_bounds = array<i64: 1>, scalar_prefetch = 0 : i64, scratch_operands = 0 : i64, tpu.core_type = #tpu.core_type<tc>, window_params = [{pipeline_mode = #tpu.pipeline_mode<synchronous>, transform_indices = @transform_0, window_bounds = array<i64: 8, 2>}, {transform_indices = @transform_1, window_bounds = array<i64: 2, 256>}, {transform_indices = @transform_2, window_bounds = array<i64: 1, 256>}, {transform_indices = @transform_3, window_bounds = array<i64: 1, 256>}, {transform_indices = @transform_4, window_bounds = array<i64: 1, 256>}, {transform_indices = @transform_5, window_bounds = array<i64: 8, 256>}]} {
    %c0 = arith.constant 0 : index
    %c0_0 = arith.constant 0 : index
    %0 = vector.load %arg1[%c0, %c0_0] : memref<8x2xf32, #tpu.memory_space<vmem>>, vector<8x2xf32>
    %c0_1 = arith.constant 0 : index
    %c0_2 = arith.constant 0 : index
    %1 = vector.load %arg2[%c0_1, %c0_2] : memref<2x256xf32, #tpu.memory_space<vmem>>, vector<2x256xf32>
    %cst = arith.constant dense<0.000000e+00> : vector<8x256xf32>
    %2 = tpu.matmul %0, %1, %cst {dimension_numbers = #tpu.dot_dimension_numbers<[1], [0], [0], [1], [0, 0, 1, 1], [], []>} : vector<8x2xf32>, vector<2x256xf32>, vector<8x256xf32> -> vector<8x256xf32>
    %c0_3 = arith.constant 0 : index
    %c0_4 = arith.constant 0 : index
    %3 = vector.load %arg3[%c0_3, %c0_4] : memref<1x256xf32, #tpu.memory_space<vmem>>, vector<1x256xf32>
    %4 = vector.broadcast %3 : vector<1x256xf32> to vector<8x256xf32>
    %5 = arith.addf %2, %4 : vector<8x256xf32>
    %cst_5 = arith.constant dense<0.000000e+00> : vector<256xf32>
    %6 = vector.multi_reduction <add>, %5, %cst_5 [0] : vector<8x256xf32> to vector<256xf32>
    %7 = vector.shape_cast %6 : vector<256xf32> to vector<1x256xf32>
    %cst_6 = arith.constant 8.000000e+00 : f32
    %8 = vector.broadcast %cst_6 : f32 to vector<1x256xf32>
    %9 = arith.divf %7, %8 : vector<1x256xf32>
    %10 = vector.broadcast %9 : vector<1x256xf32> to vector<8x256xf32>
    %11 = arith.subf %5, %10 : vector<8x256xf32>
    %12 = arith.mulf %11, %11 : vector<8x256xf32>
    %cst_7 = arith.constant dense<0.000000e+00> : vector<256xf32>
    %13 = vector.multi_reduction <add>, %12, %cst_7 [0] : vector<8x256xf32> to vector<256xf32>
    %14 = vector.shape_cast %13 : vector<256xf32> to vector<1x256xf32>
    %cst_8 = arith.constant 8.000000e+00 : f32
    %15 = vector.broadcast %cst_8 : f32 to vector<1x256xf32>
    %16 = arith.divf %14, %15 : vector<1x256xf32>
    %17 = vector.broadcast %9 : vector<1x256xf32> to vector<8x256xf32>
    %18 = arith.subf %5, %17 : vector<8x256xf32>
    %cst_9 = arith.constant 9.99999974E-6 : f32
    %19 = vector.broadcast %cst_9 : f32 to vector<1x256xf32>
    %20 = arith.addf %16, %19 : vector<1x256xf32>
    %21 = math.rsqrt %20 : vector<1x256xf32>
    %22 = vector.broadcast %21 : vector<1x256xf32> to vector<8x256xf32>
    %23 = arith.mulf %18, %22 : vector<8x256xf32>
    %c0_10 = arith.constant 0 : index
    %c0_11 = arith.constant 0 : index
    %24 = vector.load %arg4[%c0_10, %c0_11] : memref<1x256xf32, #tpu.memory_space<vmem>>, vector<1x256xf32>
    %25 = vector.broadcast %24 : vector<1x256xf32> to vector<8x256xf32>
    %26 = arith.mulf %23, %25 : vector<8x256xf32>
    %c0_12 = arith.constant 0 : index
    %c0_13 = arith.constant 0 : index
    %27 = vector.load %arg5[%c0_12, %c0_13] : memref<1x256xf32, #tpu.memory_space<vmem>>, vector<1x256xf32>
    %28 = vector.broadcast %27 : vector<1x256xf32> to vector<8x256xf32>
    %29 = arith.addf %26, %28 : vector<8x256xf32>
    %cst_14 = arith.constant 0.000000e+00 : f32
    %30 = vector.broadcast %cst_14 : f32 to vector<8x256xf32>
    %31 = arith.maximumf %29, %30 : vector<8x256xf32>
    %c0_15 = arith.constant 0 : index
    %c0_16 = arith.constant 0 : index
    %32 = vector.load %arg6[%c0_15, %c0_16] : memref<8x256xf32, #tpu.memory_space<vmem>>, vector<8x256xf32>
    tpu.vector_store %arg6[%c0_15, %c0_16], %31 {strides = array<i32>} : memref<8x256xf32, #tpu.memory_space<vmem>>, vector<8x256xf32>,
    return
  }
  func.func @transform_0(%arg0: i32) -> (i32, i32) {
    %c0_i32 = arith.constant 0 : i32
    %c0_i32_0 = arith.constant 0 : i32
    %c0_i32_1 = arith.constant 0 : i32
    return %c0_i32, %c0_i32_0 : i32, i32
  }
  func.func @transform_1(%arg0: i32) -> (i32, i32) {
    %c0_i32 = arith.constant 0 : i32
    %c0_i32_0 = arith.constant 0 : i32
    return %c0_i32, %arg0 : i32, i32
  }
  func.func @transform_2(%arg0: i32) -> (i32, i32) {
    %c0_i32 = arith.constant 0 : i32
    %c0_i32_0 = arith.constant 0 : i32
    return %c0_i32, %arg0 : i32, i32
  }
  func.func @transform_3(%arg0: i32) -> (i32, i32) {
    %c0_i32 = arith.constant 0 : i32
    %c0_i32_0 = arith.constant 0 : i32
    return %c0_i32, %arg0 : i32, i32
  }
  func.func @transform_4(%arg0: i32) -> (i32, i32) {
    %c0_i32 = arith.constant 0 : i32
    %c0_i32_0 = arith.constant 0 : i32
    return %c0_i32, %arg0 : i32, i32
  }
  func.func @transform_5(%arg0: i32) -> (i32, i32) {
    %c0_i32 = arith.constant 0 : i32
    %c0_i32_0 = arith.constant 0 : i32
    return %c0_i32, %arg0 : i32, i32
  }
}

</mosaic_0001>

<bundles_post_ra>
// kernel: tpu_custom_call.1
= control target key start
LH: loop header
LB: loop body
LE: loop exit
PB: predicated region body
PF: predicated region fallthrough
CT: control target
= control target key end

     0   :  { %vm48_vm0 = vcmask 1041408   ;;  %v243_v2 = vmov 0.0   ;;  %s302_s0 = inlined_call_operand.vmem [shape: f32[8,2], index: 0, kind: input, shape index: {}]   ;;  %s303_s1 = inlined_call_operand.vmem [shape: f32[2,256], index: 1, kind: input, shape index: {}]   ;;  %s304_s2 = inlined_call_operand.vmem [shape: f32[1,256], index: 2, kind: input, shape index: {}]   ;;  %s305_s3 = inlined_call_operand.vmem [shape: f32[1,256], index: 3, kind: input, shape index: {}]   ;;  %s306_s4 = inlined_call_operand.vmem [shape: f32[1,256], index: 4, kind: input, shape index: {}]   ;;  %s307_s5 = inlined_call_operand.hbm [shape: f32[8,256], index: 5, kind: output, shape index: {}]  }
   0x1   :  { %v209_v0 = vld.sshfl [vmem:[%s303_s1] sm:$0x33 pattern:$0x76325410]  ;;  %117 = vmatprep.mubr.f32.mxu0 %v243_v2 }
   0x2   :  { %v43_v1 = vcombine.high %v209_v0, %v209_v0 }
   0x3   :  { %10 = vsyncpa [#allocation3], 0  ;;  %v21_v3 = vld [vmem:[%s302_s0] sm:$0xff]  ;;  %vm44_vm1 = vcmask 15360   ;;  %v25_v4 = vlaneseq  ;;  %s244_s25 = smov [#allocation2]  }
   0x4   :  { %210 = vmatprep.subr.msk.mxu0 %vm48_vm0, %v43_v1  ;;  %v23_v7 = vld [vmem:[%s304_s2] sm:$0x3]  ;;  %s201_s26 = sshll.u32 %s244_s25, 4  ;;  %s202_s26 = int_to_ptr.vmem [resolvable:$true] %s201_s26 }
   0x5   :  { %211 = vmatpush1.msk.msra.mxu0 %vm48_vm0, %v209_v0  ;;  %v26_v5 = vshrl.u32 %v25_v4, 7  ;;  %v163_v49 = vld [vmem:[%s305_s3] sm:$0x3]  ;;  %s219_s3 = scalar_lea.vmem %s202_s26, 256  ;;  %p224_p1 = scmp.lt.s32.totalorder %s202_s26, %s202_s26 }
   0x6   :  { %212 = vmatmul.mubr.msk.f32.vlgmr.msra.gmra.mrb[0].mxu0 %vm44_vm1, %v21_v3  ;;  %v177_v50 = vld [vmem:[%s306_s4] sm:$0x3]  ;;  %p220_p0 = scmp.ne.s32.totalorder %s202_s26, %s219_s3  ;;  %p225_p2 = scmp.lt.s32.totalorder %s219_s3, %s219_s3 }
   0x7   :  { %v27_v6 = vsub.s32 0, %v26_v5  ;;  %v31_v8 = vsub.s32 1, %v26_v5 }
   0x8   :  { %p226_p3 = por %p225_p2, %p224_p1 }
   0x9   :  { %v28_v9 = vrot.slane %v23_v7, %v27_v6  ;;  %v32_v10 = vrot.slane %v23_v7, %v31_v8  ;;  %v168_v51 = vrot.slane %v163_v49, %v27_v6  ;;  %v172_v53 = vrot.slane %v163_v49, %v31_v8 }
   0xa   :  { %v182_v56 = vrot.slane %v177_v50, %v27_v6  ;;  %v186_v58 = vrot.slane %v177_v50, %v31_v8  ;;  %p227_p4 = pnand %p226_p3, %p220_p0 }
  0xd9   :  { %v119_v11 = vpop.f32.mrb[0].mxu0 }
  0xda   :  { %v120_v12 = vadd.f32 %v119_v11, %v28_v9  ;;  %v121_v13 = vpop.f32.mrb[1].mxu0 }
  0xdb   :  { %v122_v14 = vadd.f32 %v121_v13, %v32_v10 }
  0xdc   :  { %v124_v15 = vrot.slane %v120_v12, 4 }
  0xdd   :  { %v130_v16 = vrot.slane %v122_v14, 4 }
  0xde   :  { %v125_v17 = vadd.f32 %v124_v15, %v120_v12 }
  0xdf   :  { %v131_v18 = vadd.f32 %v130_v16, %v122_v14 }
  0xe0   :  { %v126_v19 = vrot.slane %v125_v17, 2 }
  0xe1   :  { %v132_v20 = vrot.slane %v131_v18, 2 }
  0xe2   :  { %v127_v21 = vadd.f32 %v126_v19, %v125_v17 }
  0xe3   :  { %v133_v22 = vadd.f32 %v132_v20, %v131_v18 }
  0xe4   :  { %v128_v23 = vrot.slane %v127_v21, 1 }
  0xe5   :  { %v134_v24 = vrot.slane %v133_v22, 1 }
  0xe6   :  { %v129_v25 = vadd.f32 %v128_v23, %v127_v21 }
  0xe7   :  { %v135_v26 = vadd.f32 %v134_v24, %v133_v22 }
  0xe8   :  { %v137_v27 = vmul.f32 0.125, %v129_v25 }
  0xe9   :  { %v138_v28 = vmul.f32 0.125, %v135_v26 }
  0xea   :  { %v139_v29 = vsub.f32 %v120_v12, %v137_v27 }
  0xeb   :  { %v140_v30 = vsub.f32 %v122_v14, %v138_v28 }
  0xec   :  { %v141_v31 = vmul.f32 %v139_v29, %v139_v29 }
  0xed   :  { %v142_v32 = vmul.f32 %v140_v30, %v140_v30 }
  0xee   :  { %v143_v33 = vrot.slane %v141_v31, 4 }
  0xef   :  { %v149_v34 = vrot.slane %v142_v32, 4 }
  0xf0   :  { %v144_v35 = vadd.f32 %v143_v33, %v141_v31 }
  0xf1   :  { %v150_v36 = vadd.f32 %v149_v34, %v142_v32 }
  0xf2   :  { %v145_v37 = vrot.slane %v144_v35, 2 }
  0xf3   :  { %v151_v38 = vrot.slane %v150_v36, 2 }
  0xf4   :  { %v146_v39 = vadd.f32 %v145_v37, %v144_v35 }
  0xf5   :  { %v152_v40 = vadd.f32 %v151_v38, %v150_v36 }
  0xf6   :  { %v147_v41 = vrot.slane %v146_v39, 1 }
  0xf7   :  { %v153_v42 = vrot.slane %v152_v40, 1 }
  0xf8   :  { %v148_v43 = vadd.f32 %v147_v41, %v146_v39 }
  0xf9   :  { %v154_v44 = vadd.f32 %v153_v42, %v152_v40 }
  0xfa   :  { %v155_v45 = vmul.f32 0.125, %v148_v43 }
  0xfb   :  { %v156_v46 = vmul.f32 0.125, %v154_v44 }
  0xfc   :  { %v157_v47 = vadd.f32 1e-05, %v155_v45 }
  0xfd   :  { %v158_v48 = vadd.f32 1e-05, %v156_v46 }
  0xfe   :  { %215 = vrsqrt.f32 %v157_v47 }
  0xff   :  { %217 = vrsqrt.f32 %v158_v48 }
 0x108   :  { %v216_v52 = vpop.eup %215 }
 0x109   :  { %v218_v54 = vpop.eup %217  ;;  %v161_v55 = vmul.f32 %v216_v52, %v139_v29 }
 0x10a   :  { %v162_v57 = vmul.f32 %v218_v54, %v140_v30 }
 0x10b   :  { %v175_v59 = vmul.f32 %v168_v51, %v161_v55 }
 0x10c   :  { %v176_v60 = vmul.f32 %v172_v53, %v162_v57 }
 0x10d   :  { %v189_v61 = vadd.f32 %v182_v56, %v175_v59 }
 0x10e   :  { %v190_v62 = vadd.f32 %v186_v58, %v176_v60 }
 0x10f   :  { %v191_v63 = vmax.f32 %v189_v61, 0.0 }
 0x110   :  { %v192_v0 = vmax.f32 %v190_v62, 0.0 }
 0x111   :  { %193 = vst [vmem:[#allocation2] sm:$0xff] %v191_v63 }
 0x112   :  { %194 = vst [vmem:[#allocation2 + $0x8] sm:$0xff] %v192_v0 }
 0x113   :  { %230 = shalt.err (!%p227_p4)
}
 0x114   :  { %s231_s28 = scalar_lea.hbm %s307_s5, 256 }
 0x115   :  { %p232_p5 = scmp.ne.s32.totalorder %s307_s5, %s231_s28  ;;  %p235_p6 = scmp.lt.u32.totalorder %s231_s28, %s307_s5 }
 0x117   :  { %p237_p7 = pnand %p235_p6, %p232_p5 }
 0x119   :  { %240 = shalt.err (!%p237_p7)
}
 0x11a   :  { %204 = dma.vmem_to_hbm [thread:$0]  %s202_s26, 256, %s307_s5, [#allocation3]  }
 0x11b   :  { %241 = dma.done.wait [#allocation3], 256  }
 0x11c   :  { %242 = vsyncadd [#allocation3], 4294967040 }
 0x11d   :  { %208 = vsyncpa [#allocation3], 1 }

</bundles_post_ra>
